<compile_context>
chip_gen: v6e
topology: v6e:2x2x1
jax: 0.10.0
libtpu: 0.0.40
codegen_flags: <defaults>
</compile_context>

<pallas_src>
import jax
import jax.numpy as jnp
from jax import lax
from jax.experimental import pallas as pl
from jax.experimental.pallas import tpu as pltpu

EMBEDDING_DIM = 64


def _round_up(x, m):
    return ((x + m - 1) // m) * m


def _cdiv(a, b):
    return (a + b - 1) // b


def _block_diag(w, p):
    """(a, b) -> (p*a, p*b) block-diagonal replication of w (built once in the wrapper)."""
    a, b = w.shape
    eye = jnp.eye(p, dtype=w.dtype)
    return (eye[:, None, :, None] * w[None, :, None, :]).reshape(p * a, p * b)


def _make_kernel(p, emb):
    """Kernel over row-packed blocks: x (tbp, p*in), out (tbp, p*emb)."""

    def kernel(x_ref, w1_ref, b1_ref, w2_ref, b2_ref, o_ref):
        # fc1 + ReLU (block-diagonal weights -> per-packed-row independent results).
        h = jnp.dot(x_ref[...], w1_ref[...], preferred_element_type=jnp.float32)
        h = jnp.maximum(h + b1_ref[...], 0.0)
        # fc2
        y = jnp.dot(h, w2_ref[...], preferred_element_type=jnp.float32) + b2_ref[...]

        # F.normalize(., p=2, dim=1) per original row == per 64-lane segment.
        # Exact f32 segment sums (VPU/XLU) + EUP rsqrt; clamping the squared norm at
        # 1e-24 is equivalent to clamping the norm at 1e-12 and keeps padded garbage
        # rows of a partial final tile from misbehaving (they are never written back).
        pieces = []
        for s in range(p):
            y_seg = y[:, s * emb:(s + 1) * emb]
            sq = jnp.sum(y_seg * y_seg, axis=1, keepdims=True)
            inv = lax.rsqrt(jnp.maximum(sq, 1e-24))
            pieces.append(y_seg * inv)
        out = pieces[0] if p == 1 else jnp.concatenate(pieces, axis=1)
        o_ref[...] = out.astype(o_ref.dtype)

    return kernel


def embedding_net_forward(x, w1, b1, w2, b2, *, tile_batch=8192, pack=8):
    """x: (B, input_dim); w1: (input_dim, 32); b1: (32,); w2: (32, 64); b2: (64,).

    Weights are stored transposed relative to PyTorch ((in, out)), so y = x @ W + b
    matches nn.Linear.  Returns (B, 64) float32, L2-normalized over dim=1.
    """
    B, input_dim = x.shape
    hidden = w1.shape[1]
    emb = w2.shape[1]

    # Row-packing factor: largest candidate dividing B (keeps reshapes zero-copy views).
    P = 1
    for cand in dict.fromkeys((pack, 8, 4, 2, 1)):
        if cand >= 1 and B % cand == 0:
            P = cand
            break

    Bp = B // P
    xp = x.reshape(Bp, P * input_dim)            # zero-copy row packing
    w1b = _block_diag(w1, P)                     # (P*in,     P*hidden)
    w2b = _block_diag(w2, P)                     # (P*hidden, P*emb)
    b1p = jnp.tile(b1, P).reshape(1, P * hidden)
    b2p = jnp.tile(b2, P).reshape(1, P * emb)

    # Packed-row tile: multiple of 8 sublanes (or the full extent), sized so each grid
    # step moves several MB of HBM (amortizes per-step overhead) while keeping >=4 grid
    # steps for megacore sharding when there is enough work.
    desired = max(8, ((tile_batch // P) // 8) * 8)
    if Bp >= 32:
        desired = min(desired, _round_up(_cdiv(Bp, 4), 8))
    tbp = Bp if Bp <= desired else desired
    grid_n = _cdiv(Bp, tbp)

    flops = 2 * B * P * (input_dim * hidden + hidden * emb) + 4 * B * emb
    bytes_accessed = 4 * (xp.size + B * emb + w1b.size + w2b.size + b1p.size + b2p.size)

    out_packed = pl.pallas_call(
        _make_kernel(P, emb),
        out_shape=jax.ShapeDtypeStruct((Bp, P * emb), jnp.float32),
        grid=(grid_n,),
        in_specs=[
            # Streamed over packed batch tiles (double-buffered by the pipeline).
            pl.BlockSpec((tbp, P * input_dim), lambda i: (i, 0)),
            # Weights / biases: constant block index -> VMEM-resident across all tiles.
            pl.BlockSpec((P * input_dim, P * hidden), lambda i: (0, 0)),
            pl.BlockSpec((1, P * hidden), lambda i: (0, 0)),
            pl.BlockSpec((P * hidden, P * emb), lambda i: (0, 0)),
            pl.BlockSpec((1, P * emb), lambda i: (0, 0)),
        ],
        out_specs=pl.BlockSpec((tbp, P * emb), lambda i: (i, 0)),
        compiler_params=pltpu.CompilerParams(
            dimension_semantics=("parallel",),
            vmem_limit_bytes=48 * 1024 * 1024,
        ),
        cost_estimate=pl.CostEstimate(
            flops=flops, transcendentals=B, bytes_accessed=bytes_accessed
        ),
    )(xp, w1b, b1p, w2b, b2p)

    return out_packed.reshape(B, emb)


def init_params(key, input_dim=8, hidden=32, embedding_dim=EMBEDDING_DIM):
    # Deterministic init mimicking nn.Linear default (uniform +/- 1/sqrt(fan_in)).
    k1, k2, k3, k4 = jax.random.split(key, 4)
    bound1 = 1.0 / jnp.sqrt(input_dim)
    bound2 = 1.0 / jnp.sqrt(hidden)
    w1 = jax.random.uniform(k1, (input_dim, hidden), jnp.float32, -bound1, bound1)
    b1 = jax.random.uniform(k2, (hidden,), jnp.float32, -bound1, bound1)
    w2 = jax.random.uniform(k3, (hidden, embedding_dim), jnp.float32, -bound2, bound2)
    b2 = jax.random.uniform(k4, (embedding_dim,), jnp.float32, -bound2, bound2)
    return w1, b1, w2, b2


def reference_forward(x, w1, b1, w2, b2):
    h = jnp.maximum(x @ w1 + b1, 0.0)
    y = h @ w2 + b2
    norm = jnp.sqrt(jnp.sum(y * y, axis=1, keepdims=True))
    return y / jnp.maximum(norm, 1e-12)


if __name__ == "__main__":
    key = jax.random.PRNGKey(0)
    kx, kx2, kx3, kx4, kp = jax.random.split(key, 5)

    input_dim = 8
    w1, b1, w2, b2 = init_params(kp, input_dim=input_dim)

    # Small batch: P=8 packing, single tile.
    B = 8
    x = jax.random.normal(kx, (B, input_dim), jnp.float32)
    out = jax.block_until_ready(embedding_net_forward(x, w1, b1, w2, b2))
    ref = reference_forward(x, w1, b1, w2, b2)
    assert out.shape == (B, EMBEDDING_DIM)
    assert jnp.allclose(out, ref, atol=2e-5, rtol=2e-5), "mismatch vs reference (B=8)"

    # Batch not divisible by 8 -> falls back to P=4 packing, single full-extent tile.
    B2 = 20
    x2 = jax.random.normal(kx2, (B2, input_dim), jnp.float32)
    out2 = jax.block_until_ready(embedding_net_forward(x2, w1, b1, w2, b2))
    ref2 = reference_forward(x2, w1, b1, w2, b2)
    assert out2.shape == (B2, EMBEDDING_DIM)
    assert jnp.allclose(out2, ref2, atol=2e-5, rtol=2e-5), "mismatch vs reference (B=20)"

    # Odd batch -> P=1 fallback path (unpacked layout).
    B3 = 13
    x3 = jax.random.normal(kx3, (B3, input_dim), jnp.float32)
    out3 = jax.block_until_ready(embedding_net_forward(x3, w1, b1, w2, b2))
    ref3 = reference_forward(x3, w1, b1, w2, b2)
    assert out3.shape == (B3, EMBEDDING_DIM)
    assert jnp.allclose(out3, ref3, atol=2e-5, rtol=2e-5), "mismatch vs reference (B=13)"

    # Larger batch: P=8 packing, multi-tile grid (4 parallel tiles -> megacore-friendly).
    B4 = 1024
    x4 = jax.random.normal(kx4, (B4, input_dim), jnp.float32)
    out4 = jax.block_until_ready(embedding_net_forward(x4, w1, b1, w2, b2))
    ref4 = reference_forward(x4, w1, b1, w2, b2)
    assert out4.shape == (B4, EMBEDDING_DIM)
    assert jnp.allclose(out4, ref4, atol=2e-5, rtol=2e-5), "mismatch vs reference (B=1024)"

    print("KERNEL_OK")
</pallas_src>

<mosaic_0001>
module attributes {stable_mosaic.version = 11 : i64} {
  func.func @kernel(%arg0: i32, %arg1: memref<1x64xf32, #tpu.memory_space<vmem>>, %arg2: memref<64x256xf32, #tpu.memory_space<vmem>>, %arg3: memref<1x256xf32, #tpu.memory_space<vmem>>, %arg4: memref<256x512xf32, #tpu.memory_space<vmem>>, %arg5: memref<1x512xf32, #tpu.memory_space<vmem>>, %arg6: memref<1x512xf32, #tpu.memory_space<vmem>>) attributes {dimension_semantics = [#tpu.dimension_semantics<parallel>], iteration_bounds = array<i64: 1>, scalar_prefetch = 0 : i64, scratch_operands = 0 : i64, tpu.core_type = #tpu.core_type<tc>, window_params = [{transform_indices = @transform_0, window_bounds = array<i64: 1, 64>}, {pipeline_mode = #tpu.pipeline_mode<synchronous>, transform_indices = @transform_1, window_bounds = array<i64: 64, 256>}, {pipeline_mode = #tpu.pipeline_mode<synchronous>, transform_indices = @transform_2, window_bounds = array<i64: 1, 256>}, {pipeline_mode = #tpu.pipeline_mode<synchronous>, transform_indices = @transform_3, window_bounds = array<i64: 256, 512>}, {pipeline_mode = #tpu.pipeline_mode<synchronous>, transform_indices = @transform_4, window_bounds = array<i64: 1, 512>}, {transform_indices = @transform_5, window_bounds = array<i64: 1, 512>}]} {
    %c0 = arith.constant 0 : index
    %c0_0 = arith.constant 0 : index
    %0 = vector.load %arg1[%c0, %c0_0] : memref<1x64xf32, #tpu.memory_space<vmem>>, vector<1x64xf32>
    %c0_1 = arith.constant 0 : index
    %c0_2 = arith.constant 0 : index
    %1 = vector.load %arg2[%c0_1, %c0_2] : memref<64x256xf32, #tpu.memory_space<vmem>>, vector<64x256xf32>
    %cst = arith.constant dense<0.000000e+00> : vector<1x256xf32>
    %2 = tpu.matmul %0, %1, %cst {dimension_numbers = #tpu.dot_dimension_numbers<[1], [0], [0], [1], [0, 0, 1, 1], [], []>} : vector<1x64xf32>, vector<64x256xf32>, vector<1x256xf32> -> vector<1x256xf32>
    %c0_3 = arith.constant 0 : index
    %c0_4 = arith.constant 0 : index
    %3 = vector.load %arg3[%c0_3, %c0_4] : memref<1x256xf32, #tpu.memory_space<vmem>>, vector<1x256xf32>
    %4 = arith.addf %2, %3 : vector<1x256xf32>
    %cst_5 = arith.constant 0.000000e+00 : f32
    %5 = vector.broadcast %cst_5 : f32 to vector<1x256xf32>
    %6 = arith.maximumf %4, %5 : vector<1x256xf32>
    %c0_6 = arith.constant 0 : index
    %c0_7 = arith.constant 0 : index
    %7 = vector.load %arg4[%c0_6, %c0_7] : memref<256x512xf32, #tpu.memory_space<vmem>>, vector<256x512xf32>
    %cst_8 = arith.constant dense<0.000000e+00> : vector<1x512xf32>
    %8 = tpu.matmul %6, %7, %cst_8 {dimension_numbers = #tpu.dot_dimension_numbers<[1], [0], [0], [1], [0, 0, 1, 1], [], []>} : vector<1x256xf32>, vector<256x512xf32>, vector<1x512xf32> -> vector<1x512xf32>
    %c0_9 = arith.constant 0 : index
    %c0_10 = arith.constant 0 : index
    %9 = vector.load %arg5[%c0_9, %c0_10] : memref<1x512xf32, #tpu.memory_space<vmem>>, vector<1x512xf32>
    %10 = arith.addf %8, %9 : vector<1x512xf32>
    %11 = vector.extract_strided_slice %10 {offsets = [0, 0], sizes = [1, 64], strides = [1, 1]} : vector<1x512xf32> to vector<1x64xf32>
    %12 = arith.mulf %11, %11 : vector<1x64xf32>
    %cst_11 = arith.constant dense<0.000000e+00> : vector<1xf32>
    %13 = vector.multi_reduction <add>, %12, %cst_11 [1] : vector<1x64xf32> to vector<1xf32>
    %14 = vector.shape_cast %13 : vector<1xf32> to vector<1x1xf32>
    %cst_12 = arith.constant 1.000000e-24 : f32
    %15 = vector.broadcast %cst_12 : f32 to vector<1x1xf32>
    %16 = arith.maximumf %14, %15 : vector<1x1xf32>
    %17 = math.rsqrt %16 : vector<1x1xf32>
    %18 = vector.broadcast %17 : vector<1x1xf32> to vector<1x64xf32>
    %19 = arith.mulf %11, %18 : vector<1x64xf32>
    %20 = vector.extract_strided_slice %10 {offsets = [0, 64], sizes = [1, 64], strides = [1, 1]} : vector<1x512xf32> to vector<1x64xf32>
    %21 = arith.mulf %20, %20 : vector<1x64xf32>
    %cst_13 = arith.constant dense<0.000000e+00> : vector<1xf32>
    %22 = vector.multi_reduction <add>, %21, %cst_13 [1] : vector<1x64xf32> to vector<1xf32>
    %23 = vector.shape_cast %22 : vector<1xf32> to vector<1x1xf32>
    %cst_14 = arith.constant 1.000000e-24 : f32
    %24 = vector.broadcast %cst_14 : f32 to vector<1x1xf32>
    %25 = arith.maximumf %23, %24 : vector<1x1xf32>
    %26 = math.rsqrt %25 : vector<1x1xf32>
    %27 = vector.broadcast %26 : vector<1x1xf32> to vector<1x64xf32>
    %28 = arith.mulf %20, %27 : vector<1x64xf32>
    %29 = vector.extract_strided_slice %10 {offsets = [0, 128], sizes = [1, 64], strides = [1, 1]} : vector<1x512xf32> to vector<1x64xf32>
    %30 = arith.mulf %29, %29 : vector<1x64xf32>
    %cst_15 = arith.constant dense<0.000000e+00> : vector<1xf32>
    %31 = vector.multi_reduction <add>, %30, %cst_15 [1] : vector<1x64xf32> to vector<1xf32>
    %32 = vector.shape_cast %31 : vector<1xf32> to vector<1x1xf32>
    %cst_16 = arith.constant 1.000000e-24 : f32
    %33 = vector.broadcast %cst_16 : f32 to vector<1x1xf32>
    %34 = arith.maximumf %32, %33 : vector<1x1xf32>
    %35 = math.rsqrt %34 : vector<1x1xf32>
    %36 = vector.broadcast %35 : vector<1x1xf32> to vector<1x64xf32>
    %37 = arith.mulf %29, %36 : vector<1x64xf32>
    %38 = vector.extract_strided_slice %10 {offsets = [0, 192], sizes = [1, 64], strides = [1, 1]} : vector<1x512xf32> to vector<1x64xf32>
    %39 = arith.mulf %38, %38 : vector<1x64xf32>
    %cst_17 = arith.constant dense<0.000000e+00> : vector<1xf32>
    %40 = vector.multi_reduction <add>, %39, %cst_17 [1] : vector<1x64xf32> to vector<1xf32>
    %41 = vector.shape_cast %40 : vector<1xf32> to vector<1x1xf32>
    %cst_18 = arith.constant 1.000000e-24 : f32
    %42 = vector.broadcast %cst_18 : f32 to vector<1x1xf32>
    %43 = arith.maximumf %41, %42 : vector<1x1xf32>
    %44 = math.rsqrt %43 : vector<1x1xf32>
    %45 = vector.broadcast %44 : vector<1x1xf32> to vector<1x64xf32>
    %46 = arith.mulf %38, %45 : vector<1x64xf32>
    %47 = vector.extract_strided_slice %10 {offsets = [0, 256], sizes = [1, 64], strides = [1, 1]} : vector<1x512xf32> to vector<1x64xf32>
    %48 = arith.mulf %47, %47 : vector<1x64xf32>
    %cst_19 = arith.constant dense<0.000000e+00> : vector<1xf32>
    %49 = vector.multi_reduction <add>, %48, %cst_19 [1] : vector<1x64xf32> to vector<1xf32>
    %50 = vector.shape_cast %49 : vector<1xf32> to vector<1x1xf32>
    %cst_20 = arith.constant 1.000000e-24 : f32
    %51 = vector.broadcast %cst_20 : f32 to vector<1x1xf32>
    %52 = arith.maximumf %50, %51 : vector<1x1xf32>
    %53 = math.rsqrt %52 : vector<1x1xf32>
    %54 = vector.broadcast %53 : vector<1x1xf32> to vector<1x64xf32>
    %55 = arith.mulf %47, %54 : vector<1x64xf32>
    %56 = vector.extract_strided_slice %10 {offsets = [0, 320], sizes = [1, 64], strides = [1, 1]} : vector<1x512xf32> to vector<1x64xf32>
    %57 = arith.mulf %56, %56 : vector<1x64xf32>
    %cst_21 = arith.constant dense<0.000000e+00> : vector<1xf32>
    %58 = vector.multi_reduction <add>, %57, %cst_21 [1] : vector<1x64xf32> to vector<1xf32>
    %59 = vector.shape_cast %58 : vector<1xf32> to vector<1x1xf32>
    %cst_22 = arith.constant 1.000000e-24 : f32
    %60 = vector.broadcast %cst_22 : f32 to vector<1x1xf32>
    %61 = arith.maximumf %59, %60 : vector<1x1xf32>
    %62 = math.rsqrt %61 : vector<1x1xf32>
    %63 = vector.broadcast %62 : vector<1x1xf32> to vector<1x64xf32>
    %64 = arith.mulf %56, %63 : vector<1x64xf32>
    %65 = vector.extract_strided_slice %10 {offsets = [0, 384], sizes = [1, 64], strides = [1, 1]} : vector<1x512xf32> to vector<1x64xf32>
    %66 = arith.mulf %65, %65 : vector<1x64xf32>
    %cst_23 = arith.constant dense<0.000000e+00> : vector<1xf32>
    %67 = vector.multi_reduction <add>, %66, %cst_23 [1] : vector<1x64xf32> to vector<1xf32>
    %68 = vector.shape_cast %67 : vector<1xf32> to vector<1x1xf32>
    %cst_24 = arith.constant 1.000000e-24 : f32
    %69 = vector.broadcast %cst_24 : f32 to vector<1x1xf32>
    %70 = arith.maximumf %68, %69 : vector<1x1xf32>
    %71 = math.rsqrt %70 : vector<1x1xf32>
    %72 = vector.broadcast %71 : vector<1x1xf32> to vector<1x64xf32>
    %73 = arith.mulf %65, %72 : vector<1x64xf32>
    %74 = vector.extract_strided_slice %10 {offsets = [0, 448], sizes = [1, 64], strides = [1, 1]} : vector<1x512xf32> to vector<1x64xf32>
    %75 = arith.mulf %74, %74 : vector<1x64xf32>
    %cst_25 = arith.constant dense<0.000000e+00> : vector<1xf32>
    %76 = vector.multi_reduction <add>, %75, %cst_25 [1] : vector<1x64xf32> to vector<1xf32>
    %77 = vector.shape_cast %76 : vector<1xf32> to vector<1x1xf32>
    %cst_26 = arith.constant 1.000000e-24 : f32
    %78 = vector.broadcast %cst_26 : f32 to vector<1x1xf32>
    %79 = arith.maximumf %77, %78 : vector<1x1xf32>
    %80 = math.rsqrt %79 : vector<1x1xf32>
    %81 = vector.broadcast %80 : vector<1x1xf32> to vector<1x64xf32>
    %82 = arith.mulf %74, %81 : vector<1x64xf32>
    %83 = tpu.concatenate %19, %28, %37, %46, %55, %64, %73, %82 in 1 : vector<1x64xf32>, vector<1x64xf32>, vector<1x64xf32>, vector<1x64xf32>, vector<1x64xf32>, vector<1x64xf32>, vector<1x64xf32>, vector<1x64xf32> -> vector<1x512xf32>
    %c0_27 = arith.constant 0 : index
    %c0_28 = arith.constant 0 : index
    %84 = vector.load %arg6[%c0_27, %c0_28] : memref<1x512xf32, #tpu.memory_space<vmem>>, vector<1x512xf32>
    tpu.vector_store %arg6[%c0_27, %c0_28], %83 {strides = array<i32>} : memref<1x512xf32, #tpu.memory_space<vmem>>, vector<1x512xf32>,
    return
  }
  func.func @transform_0(%arg0: i32) -> (i32, i32) {
    %c0_i32 = arith.constant 0 : i32
    %c0_i32_0 = arith.constant 0 : i32
    return %arg0, %c0_i32 : i32, i32
  }
  func.func @transform_1(%arg0: i32) -> (i32, i32) {
    %c0_i32 = arith.constant 0 : i32
    %c0_i32_0 = arith.constant 0 : i32
    %c0_i32_1 = arith.constant 0 : i32
    return %c0_i32, %c0_i32_0 : i32, i32
  }
  func.func @transform_2(%arg0: i32) -> (i32, i32) {
    %c0_i32 = arith.constant 0 : i32
    %c0_i32_0 = arith.constant 0 : i32
    %c0_i32_1 = arith.constant 0 : i32
    return %c0_i32, %c0_i32_0 : i32, i32
  }
  func.func @transform_3(%arg0: i32) -> (i32, i32) {
    %c0_i32 = arith.constant 0 : i32
    %c0_i32_0 = arith.constant 0 : i32
    %c0_i32_1 = arith.constant 0 : i32
    return %c0_i32, %c0_i32_0 : i32, i32
  }
  func.func @transform_4(%arg0: i32) -> (i32, i32) {
    %c0_i32 = arith.constant 0 : i32
    %c0_i32_0 = arith.constant 0 : i32
    %c0_i32_1 = arith.constant 0 : i32
    return %c0_i32, %c0_i32_0 : i32, i32
  }
  func.func @transform_5(%arg0: i32) -> (i32, i32) {
    %c0_i32 = arith.constant 0 : i32
    %c0_i32_0 = arith.constant 0 : i32
    return %arg0, %c0_i32 : i32, i32
  }
}

</mosaic_0001>

<bundles_post_ra>
// kernel: tpu_custom_call.1
= control target key start
LH: loop header
LB: loop body
LE: loop exit
PB: predicated region body
PF: predicated region fallthrough
CT: control target
= control target key end

     0   :  { %10 = vsyncpa [#allocation3], 0  ;;  %s800_s0 = inlined_call_operand.hbm [shape: f32[1,64], index: 0, kind: input, shape index: {}]   ;;  %s801_s1 = inlined_call_operand.hbm [shape: f32[64,256], index: 1, kind: input, shape index: {}]   ;;  %s802_s2 = inlined_call_operand.vmem [shape: f32[1,256], index: 2, kind: input, shape index: {}]   ;;  %s803_s3 = inlined_call_operand.hbm [shape: f32[256,512], index: 3, kind: input, shape index: {}]   ;;  %s804_s4 = inlined_call_operand.vmem [shape: f32[1,512], index: 4, kind: input, shape index: {}]   ;;  %s805_s5 = inlined_call_operand.hbm [shape: f32[1,512], index: 5, kind: output, shape index: {}]  }
   0x1   :  { %11 = vsyncpa [#allocation6], 0 }
   0x2   :  { %12 = vsyncpa [#allocation4], 0  ;;  %s695_s18 = smov [#allocation5]  }
   0x3   :  { %s28_s19 = sshll.u32 %s695_s18, 4  ;;  %s29_s19 = int_to_ptr.vmem [resolvable:$true] %s28_s19 }
   0x4   :  { %s617_s20 = scalar_lea.vmem %s29_s19, 2048  ;;  %p622_p1 = scmp.lt.s32.totalorder %s29_s19, %s29_s19 }
   0x5   :  { %p618_p0 = scmp.ne.s32.totalorder %s29_s19, %s617_s20  ;;  %p623_p2 = scmp.lt.s32.totalorder %s617_s20, %s617_s20 }
   0x7   :  { %p624_p3 = por %p623_p2, %p622_p1 }
   0x9   :  { %p625_p4 = pnand %p624_p3, %p618_p0 }
   0xb   :  { %628 = shalt.err (!%p625_p4)
}
   0xc   :  { %s696_s21 = smov 256   ;;  %s697_s22 = smov 16  }
   0xd   :  { %34 = dma.hbm_to_vmem [thread:$0]  %s801_s1, 2048, %s29_s19, [#allocation6], %s696_s21, %s696_s21, %s697_s22  }
   0xe   :  { %s698_s25 = smov [#allocation2]   ;;  %s699_s27 = smov [#allocation7]  }
   0xf   :  { %s19_s26 = sshll.u32 %s698_s25, 4  ;;  %s42_s28 = sshll.u32 %s699_s27, 4  ;;  %s20_s26 = int_to_ptr.vmem [resolvable:$true] %s19_s26  ;;  %s43_s28 = int_to_ptr.vmem [resolvable:$true] %s42_s28 }
  0x10   :  { %s637_s29 = scalar_lea.vmem %s20_s26, 16  ;;  %s641_s30 = scalar_lea.vmem %s20_s26, 32 }
  0x11   :  { %p638_p5 = scmp.ne.s32.totalorder %s20_s26, %s637_s29  ;;  %p642_p6 = scmp.lt.s32.totalorder %s20_s26, %s20_s26 }
  0x12   :  { %p643_p7 = scmp.lt.s32.totalorder %s641_s30, %s637_s29 }
  0x14   :  { %p644_p8 = por %p643_p7, %p642_p6 }
  0x16   :  { %p645_p9 = pnand %p644_p8, %p638_p5 }
  0x18   :  { %648 = shalt.err (!%p645_p9)
}
  0x19   :  { %22 = dma.hbm_to_vmem [thread:$0]  %s800_s0, 16, %s20_s26, [#allocation3]  }
  0x1a   :  { %s657_s8 = scalar_lea.vmem %s43_s28, 16384  ;;  %p662_p11 = scmp.lt.s32.totalorder %s43_s28, %s43_s28 }
  0x1b   :  { %p658_p10 = scmp.ne.s32.totalorder %s43_s28, %s657_s8  ;;  %p663_p12 = scmp.lt.s32.totalorder %s657_s8, %s657_s8 }
  0x1d   :  { %p664_p13 = por %p663_p12, %p662_p11 }
  0x1f   :  { %p665_p0 = pnand %p664_p13, %p658_p10 }
  0x21   :  { %668 = shalt.err (!%p665_p0)
}
  0x22   :  { %s700_s1 = smov 512   ;;  %s701_s9 = smov 32  }
  0x23   :  { %48 = dma.hbm_to_vmem [thread:$0]  %s803_s3, 16384, %s43_s28, [#allocation6], %s700_s1, %s700_s1, %s701_s9  }
  0x24   :  { %689 = dma.done.wait [#allocation3], 16  }
  0x25   :  { %690 = vsyncadd [#allocation3], 4294967280 }
  0x26   :  { %691 = dma.done.wait [#allocation6], 18432  }
  0x27   :  { %692 = vsyncadd [#allocation6], 4294948864  ;;  %v702_v0 = vmov 0.0   ;;  %v76_v1 = vld [vmem:[#allocation5 + $0x78] sm:$0xff]  ;;  %v75_v2 = vld [vmem:[#allocation5 + $0x70] sm:$0xff]  ;;  %vm89_vm0 = vcmask 523264  }
  0x28   :  { %157 = vmatprep.mubr.f32.mxu0 %v702_v0  ;;  %v74_v3 = vld [vmem:[#allocation5 + $0x68] sm:$0xff]  ;;  %109 = vmatprep.subr.mxu0 %v76_v1  ;;  %v73_v4 = vld [vmem:[#allocation5 + $0x60] sm:$0xff]  ;;  %v72_v5 = vld [vmem:[#allocation5 + $0x58] sm:$0xff]  ;;  %vm459_vm1 = vcmask 516096  }
  0x29   :  { %110 = vmatpush1.msra.mxu0 %v75_v2  ;;  %v71_v6 = vld [vmem:[#allocation5 + $0x50] sm:$0xff]  ;;  %v70_v7 = vld [vmem:[#allocation5 + $0x48] sm:$0xff]  ;;  %v69_v8 = vld [vmem:[#allocation5 + $0x40] sm:$0xff] }
  0x2a   :  { %111 = vmatprep.subr.mxu0 %v74_v3  ;;  %v227_v9 = vld [vmem:[#allocation7 + $0x1e8] sm:$0xff]  ;;  %v68_v10 = vld [vmem:[#allocation5 + $0x38] sm:$0xff]  ;;  %v226_v11 = vld [vmem:[#allocation7 + $0x1e0] sm:$0xff] }
  0x2b   :  { %112 = vmatpush1.msra.mxu0 %v73_v4  ;;  %316 = vmatprep.subr.mxu1 %v227_v9  ;;  %v67_v12 = vld [vmem:[#allocation5 + $0x30] sm:$0xff]  ;;  %v223_v13 = vld [vmem:[#allocation7 + $0x1c8] sm:$0xff]  ;;  %v222_v14 = vld [vmem:[#allocation7 + $0x1c0] sm:$0xff] }
  0x2c   :  { %113 = vmatprep.subr.mxu0 %v72_v5  ;;  %317 = vmatpush1.msra.mxu1 %v226_v11  ;;  %v66_v15 = vld [vmem:[#allocation5 + $0x28] sm:$0xff]  ;;  %v65_v17 = vld [vmem:[#allocation5 + $0x20] sm:$0xff]  ;;  %v64_v20 = vld [vmem:[#allocation5 + $0x18] sm:$0xff] }
  0x2d   :  { %114 = vmatpush1.msra.mxu0 %v71_v6  ;;  %318 = vmatprep.subr.mxu1 %v223_v13  ;;  %v219_v16 = vld [vmem:[#allocation7 + $0x1a8] sm:$0xff]  ;;  %v218_v18 = vld [vmem:[#allocation7 + $0x1a0] sm:$0xff]  ;;  %v63_v22 = vld [vmem:[#allocation5 + $0x10] sm:$0xff] }
  0x2e   :  { %115 = vmatprep.subr.mxu0 %v70_v7  ;;  %319 = vmatpush1.msra.mxu1 %v222_v14  ;;  %v215_v19 = vld [vmem:[#allocation7 + $0x188] sm:$0xff]  ;;  %v214_v21 = vld [vmem:[#allocation7 + $0x180] sm:$0xff]  ;;  %v60_v28 = vld [vmem:[#allocation2] sm:$0x1] }
  0x2f   :  { %116 = vmatpush1.msra.mxu0 %v69_v8  ;;  %320 = vmatprep.subr.mxu1 %v219_v16  ;;  %v211_v23 = vld [vmem:[#allocation7 + $0x168] sm:$0xff]  ;;  %v210_v25 = vld [vmem:[#allocation7 + $0x160] sm:$0xff]  ;;  %v229_v29 = vld [vmem:[#allocation7 + $0x1f8] sm:$0xff] }
  0x30   :  { %117 = vmatprep.subr.mxu0 %v68_v10  ;;  %321 = vmatpush1.msra.mxu1 %v218_v18  ;;  %v62_v24 = vld [vmem:[#allocation5 + $0x8] sm:$0xff]  ;;  %v61_v26 = vld [vmem:[#allocation5] sm:$0xff]  ;;  %v228_v30 = vld [vmem:[#allocation7 + $0x1f0] sm:$0xff] }
  0x31   :  { %118 = vmatpush1.msra.mxu0 %v67_v12  ;;  %322 = vmatprep.subr.mxu1 %v215_v19  ;;  %v207_v27 = vld [vmem:[#allocation7 + $0x148] sm:$0xff]  ;;  %v206_v31 = vld [vmem:[#allocation7 + $0x140] sm:$0xff]  ;;  %v225_v32 = vld [vmem:[#allocation7 + $0x1d8] sm:$0xff] }
  0x32   :  { %119 = vmatprep.subr.mxu0 %v66_v15  ;;  %323 = vmatpush1.msra.mxu1 %v214_v21  ;;  %v203_v33 = vld [vmem:[#allocation7 + $0x128] sm:$0xff]  ;;  %v224_v34 = vld [vmem:[#allocation7 + $0x1d0] sm:$0xff]  ;;  %v202_v35 = vld [vmem:[#allocation7 + $0x120] sm:$0xff] }
  0x33   :  { %120 = vmatpush1.msra.mxu0 %v65_v17  ;;  %324 = vmatprep.subr.mxu1 %v211_v23  ;;  %v221_v36 = vld [vmem:[#allocation7 + $0x1b8] sm:$0xff]  ;;  %v199_v37 = vld [vmem:[#allocation7 + $0x108] sm:$0xff]  ;;  %v220_v38 = vld [vmem:[#allocation7 + $0x1b0] sm:$0xff] }
  0x34   :  { %121 = vmatprep.subr.mxu0 %v64_v20  ;;  %325 = vmatpush1.msra.mxu1 %v210_v25  ;;  %v198_v39 = vld [vmem:[#allocation7 + $0x100] sm:$0xff]  ;;  %v217_v40 = vld [vmem:[#allocation7 + $0x198] sm:$0xff]  ;;  %v195_v41 = vld [vmem:[#allocation7 + $0xe8] sm:$0xff] }
  0x35   :  { %122 = vmatpush1.msra.mxu0 %v63_v22  ;;  %326 = vmatprep.subr.mxu1 %v207_v27  ;;  %v216_v42 = vld [vmem:[#allocation7 + $0x190] sm:$0xff]  ;;  %v194_v43 = vld [vmem:[#allocation7 + $0xe0] sm:$0xff]  ;;  %v213_v44 = vld [vmem:[#allocation7 + $0x178] sm:$0xff] }
  0x36   :  { %123 = vmatprep.subr.mxu0 %v62_v24  ;;  %327 = vmatpush1.msra.mxu1 %v206_v31  ;;  %v191_v45 = vld [vmem:[#allocation7 + $0xc8] sm:$0xff]  ;;  %v212_v46 = vld [vmem:[#allocation7 + $0x170] sm:$0xff]  ;;  %v190_v47 = vld [vmem:[#allocation7 + $0xc0] sm:$0xff] }
  0x37   :  { %124 = vmatpush1.msra.mxu0 %v61_v26  ;;  %328 = vmatprep.subr.mxu1 %v203_v33  ;;  %v209_v48 = vld [vmem:[#allocation7 + $0x158] sm:$0xff]  ;;  %v187_v49 = vld [vmem:[#allocation7 + $0xa8] sm:$0xff]  ;;  %v208_v50 = vld [vmem:[#allocation7 + $0x150] sm:$0xff] }
  0x38   :  { %581 = vmatmul.mubr.msk.f32.vlgmr.msra.gmra.mxu0 %vm89_vm0, %v60_v28  ;;  %387 = vmatprep.subr.mxu0 %v229_v29  ;;  %v186_v51 = vld [vmem:[#allocation7 + $0xa0] sm:$0xff]  ;;  %v205_v52 = vld [vmem:[#allocation7 + $0x138] sm:$0xff]  ;;  %v183_v53 = vld [vmem:[#allocation7 + $0x88] sm:$0xff] }
  0x39   :  { %388 = vmatpush1.msra.mxu0 %v228_v30  ;;  %329 = vmatpush1.msra.mxu1 %v202_v35  ;;  %v204_v54 = vld [vmem:[#allocation7 + $0x130] sm:$0xff]  ;;  %v182_v55 = vld [vmem:[#allocation7 + $0x80] sm:$0xff]  ;;  %v201_v56 = vld [vmem:[#allocation7 + $0x118] sm:$0xff] }
  0x3a   :  { %389 = vmatprep.subr.mxu0 %v225_v32  ;;  %330 = vmatprep.subr.mxu1 %v199_v37  ;;  %v179_v57 = vld [vmem:[#allocation7 + $0x68] sm:$0xff]  ;;  %v200_v58 = vld [vmem:[#allocation7 + $0x110] sm:$0xff]  ;;  %v178_v59 = vld [vmem:[#allocation7 + $0x60] sm:$0xff] }
  0x3b   :  { %390 = vmatpush1.msra.mxu0 %v224_v34  ;;  %331 = vmatpush1.msra.mxu1 %v198_v39  ;;  %v197_v60 = vld [vmem:[#allocation7 + $0xf8] sm:$0xff]  ;;  %v175_v61 = vld [vmem:[#allocation7 + $0x48] sm:$0xff]  ;;  %v196_v62 = vld [vmem:[#allocation7 + $0xf0] sm:$0xff] }
  0x3c   :  { %391 = vmatprep.subr.mxu0 %v221_v36  ;;  %332 = vmatprep.subr.mxu1 %v195_v41  ;;  %v174_v63 = vld [vmem:[#allocation7 + $0x40] sm:$0xff]  ;;  %v193_v0 = vld [vmem:[#allocation7 + $0xd8] sm:$0xff]  ;;  %v171_v1 = vld [vmem:[#allocation7 + $0x28] sm:$0xff] }
  0x3d   :  { %392 = vmatpush1.msra.mxu0 %v220_v38  ;;  %333 = vmatpush1.msra.mxu1 %v194_v43  ;;  %v192_v2 = vld [vmem:[#allocation7 + $0xd0] sm:$0xff]  ;;  %v170_v3 = vld [vmem:[#allocation7 + $0x20] sm:$0xff]  ;;  %v189_v4 = vld [vmem:[#allocation7 + $0xb8] sm:$0xff] }
  0x3e   :  { %393 = vmatprep.subr.mxu0 %v217_v40  ;;  %334 = vmatprep.subr.mxu1 %v191_v45  ;;  %v167_v5 = vld [vmem:[#allocation7 + $0x8] sm:$0xff]  ;;  %v188_v6 = vld [vmem:[#allocation7 + $0xb0] sm:$0xff]  ;;  %v166_v7 = vld [vmem:[#allocation7] sm:$0xff] }
  0x3f   :  { %394 = vmatpush1.msra.mxu0 %v216_v42  ;;  %335 = vmatpush1.msra.mxu1 %v190_v47  ;;  %v185_v8 = vld [vmem:[#allocation7 + $0x98] sm:$0xff]  ;;  %v291_v9 = vld [vmem:[#allocation7 + $0x3e8] sm:$0xff]  ;;  %v184_v10 = vld [vmem:[#allocation7 + $0x90] sm:$0xff] }
  0x40   :  { %395 = vmatprep.subr.mxu0 %v213_v44  ;;  %336 = vmatprep.subr.mxu1 %v187_v49  ;;  %v290_v11 = vld [vmem:[#allocation7 + $0x3e0] sm:$0xff]  ;;  %v181_v12 = vld [vmem:[#allocation7 + $0x78] sm:$0xff]  ;;  %v287_v13 = vld [vmem:[#allocation7 + $0x3c8] sm:$0xff] }
  0x41   :  { %396 = vmatpush1.msra.mxu0 %v212_v46  ;;  %337 = vmatpush1.msra.mxu1 %v186_v51  ;;  %v180_v14 = vld [vmem:[#allocation7 + $0x70] sm:$0xff]  ;;  %v286_v15 = vld [vmem:[#allocation7 + $0x3c0] sm:$0xff]  ;;  %v177_v16 = vld [vmem:[#allocation7 + $0x58] sm:$0xff] }
  0x42   :  { %397 = vmatprep.subr.mxu0 %v209_v48  ;;  %338 = vmatprep.subr.mxu1 %v183_v53  ;;  %v283_v17 = vld [vmem:[#allocation7 + $0x3a8] sm:$0xff]  ;;  %v176_v18 = vld [vmem:[#allocation7 + $0x50] sm:$0xff]  ;;  %v282_v19 = vld [vmem:[#allocation7 + $0x3a0] sm:$0xff] }
  0x43   :  { %398 = vmatpush1.msra.mxu0 %v208_v50  ;;  %339 = vmatpush1.msra.mxu1 %v182_v55  ;;  %v173_v20 = vld [vmem:[#allocation7 + $0x38] sm:$0xff]  ;;  %v279_v21 = vld [vmem:[#allocation7 + $0x388] sm:$0xff]  ;;  %v172_v22 = vld [vmem:[#allocation7 + $0x30] sm:$0xff] }
  0x44   :  { %399 = vmatprep.subr.mxu0 %v205_v52  ;;  %340 = vmatprep.subr.mxu1 %v179_v57  ;;  %v278_v23 = vld [vmem:[#allocation7 + $0x380] sm:$0xff]  ;;  %v169_v24 = vld [vmem:[#allocation7 + $0x18] sm:$0xff]  ;;  %v275_v25 = vld [vmem:[#allocation7 + $0x368] sm:$0xff] }
  0x45   :  { %400 = vmatpush1.msra.mxu0 %v204_v54  ;;  %341 = vmatpush1.msra.mxu1 %v178_v59  ;;  %v168_v26 = vld [vmem:[#allocation7 + $0x10] sm:$0xff]  ;;  %v274_v27 = vld [vmem:[#allocation7 + $0x360] sm:$0xff]  ;;  %v293_v28 = vld [vmem:[#allocation7 + $0x3f8] sm:$0xff] }
  0x46   :  { %401 = vmatprep.subr.mxu0 %v201_v56  ;;  %342 = vmatprep.subr.mxu1 %v175_v61  ;;  %v271_v29 = vld [vmem:[#allocation7 + $0x348] sm:$0xff]  ;;  %v292_v30 = vld [vmem:[#allocation7 + $0x3f0] sm:$0xff]  ;;  %v270_v31 = vld [vmem:[#allocation7 + $0x340] sm:$0xff] }
  0x47   :  { %402 = vmatpush1.msra.mxu0 %v200_v58  ;;  %343 = vmatpush1.msra.mxu1 %v174_v63  ;;  %v289_v32 = vld [vmem:[#allocation7 + $0x3d8] sm:$0xff]  ;;  %v267_v33 = vld [vmem:[#allocation7 + $0x328] sm:$0xff]  ;;  %v288_v34 = vld [vmem:[#allocation7 + $0x3d0] sm:$0xff] }
  0x48   :  { %403 = vmatprep.subr.mxu0 %v197_v60  ;;  %344 = vmatprep.subr.mxu1 %v171_v1  ;;  %v266_v35 = vld [vmem:[#allocation7 + $0x320] sm:$0xff]  ;;  %v285_v36 = vld [vmem:[#allocation7 + $0x3b8] sm:$0xff]  ;;  %v263_v37 = vld [vmem:[#allocation7 + $0x308] sm:$0xff] }
  0x49   :  { %404 = vmatpush1.msra.mxu0 %v196_v62  ;;  %345 = vmatpush1.msra.mxu1 %v170_v3  ;;  %v284_v38 = vld [vmem:[#allocation7 + $0x3b0] sm:$0xff]  ;;  %v262_v39 = vld [vmem:[#allocation7 + $0x300] sm:$0xff]  ;;  %v281_v40 = vld [vmem:[#allocation7 + $0x398] sm:$0xff] }
  0x4a   :  { %405 = vmatprep.subr.mxu0 %v193_v0  ;;  %346 = vmatprep.subr.mxu1 %v167_v5  ;;  %v259_v41 = vld [vmem:[#allocation7 + $0x2e8] sm:$0xff]  ;;  %v280_v42 = vld [vmem:[#allocation7 + $0x390] sm:$0xff]  ;;  %v258_v43 = vld [vmem:[#allocation7 + $0x2e0] sm:$0xff] }
  0x4b   :  { %406 = vmatpush1.msra.mxu0 %v192_v2  ;;  %347 = vmatpush1.msra.mxu1 %v166_v7  ;;  %v277_v44 = vld [vmem:[#allocation7 + $0x378] sm:$0xff]  ;;  %v255_v45 = vld [vmem:[#allocation7 + $0x2c8] sm:$0xff]  ;;  %v276_v46 = vld [vmem:[#allocation7 + $0x370] sm:$0xff] }
  0x4c   :  { %407 = vmatprep.subr.mxu0 %v189_v4  ;;  %348 = vmatprep.subr.mxu1 %v291_v9  ;;  %v254_v47 = vld [vmem:[#allocation7 + $0x2c0] sm:$0xff]  ;;  %v273_v48 = vld [vmem:[#allocation7 + $0x358] sm:$0xff]  ;;  %v251_v49 = vld [vmem:[#allocation7 + $0x2a8] sm:$0xff] }
  0x4d   :  { %408 = vmatpush1.msra.mxu0 %v188_v6  ;;  %349 = vmatpush2.msra.mxu1 %v290_v11  ;;  %v272_v50 = vld [vmem:[#allocation7 + $0x350] sm:$0xff]  ;;  %v250_v51 = vld [vmem:[#allocation7 + $0x2a0] sm:$0xff]  ;;  %v269_v52 = vld [vmem:[#allocation7 + $0x338] sm:$0xff] }
  0x4e   :  { %409 = vmatprep.subr.mxu0 %v185_v8  ;;  %350 = vmatprep.subr.mxu1 %v287_v13  ;;  %v247_v53 = vld [vmem:[#allocation7 + $0x288] sm:$0xff]  ;;  %v268_v54 = vld [vmem:[#allocation7 + $0x330] sm:$0xff]  ;;  %v246_v55 = vld [vmem:[#allocation7 + $0x280] sm:$0xff] }
  0x4f   :  { %410 = vmatpush1.msra.mxu0 %v184_v10  ;;  %351 = vmatpush2.msra.mxu1 %v286_v15  ;;  %v265_v56 = vld [vmem:[#allocation7 + $0x318] sm:$0xff]  ;;  %v264_v57 = vld [vmem:[#allocation7 + $0x310] sm:$0xff]  ;;  %v243_v2 = vld [vmem:[#allocation7 + $0x268] sm:$0xff] }
  0x50   :  { %411 = vmatprep.subr.mxu0 %v181_v12  ;;  %352 = vmatprep.subr.mxu1 %v283_v17  ;;  %v261_v58 = vld [vmem:[#allocation7 + $0x2f8] sm:$0xff]  ;;  %v260_v59 = vld [vmem:[#allocation7 + $0x2f0] sm:$0xff]  ;;  %v242_v4 = vld [vmem:[#allocation7 + $0x260] sm:$0xff] }
  0x51   :  { %412 = vmatpush1.msra.mxu0 %v180_v14  ;;  %353 = vmatpush2.msra.mxu1 %v282_v19  ;;  %v257_v60 = vld [vmem:[#allocation7 + $0x2d8] sm:$0xff]  ;;  %v256_v61 = vld [vmem:[#allocation7 + $0x2d0] sm:$0xff]  ;;  %v239_v6 = vld [vmem:[#allocation7 + $0x248] sm:$0xff] }
  0x52   :  { %413 = vmatprep.subr.mxu0 %v177_v16  ;;  %354 = vmatprep.subr.mxu1 %v279_v21  ;;  %v253_v62 = vld [vmem:[#allocation7 + $0x2b8] sm:$0xff]  ;;  %v252_v63 = vld [vmem:[#allocation7 + $0x2b0] sm:$0xff]  ;;  %v238_v8 = vld [vmem:[#allocation7 + $0x240] sm:$0xff] }
  0x53   :  { %414 = vmatpush1.msra.mxu0 %v176_v18  ;;  %355 = vmatpush2.msra.mxu1 %v278_v23  ;;  %v249_v0 = vld [vmem:[#allocation7 + $0x298] sm:$0xff]  ;;  %v248_v1 = vld [vmem:[#allocation7 + $0x290] sm:$0xff]  ;;  %v235_v10 = vld [vmem:[#allocation7 + $0x228] sm:$0xff]  ;;  %v79_v18 = vlaneseq }
  0x54   :  { %415 = vmatprep.subr.mxu0 %v173_v20  ;;  %356 = vmatprep.subr.mxu1 %v275_v25  ;;  %v245_v3 = vld [vmem:[#allocation7 + $0x278] sm:$0xff]  ;;  %v244_v5 = vld [vmem:[#allocation7 + $0x270] sm:$0xff]  ;;  %v234_v12 = vld [vmem:[#allocation7 + $0x220] sm:$0xff] }
  0x55   :  { %416 = vmatpush1.msra.mxu0 %v172_v22  ;;  %357 = vmatpush2.msra.mxu1 %v274_v27  ;;  %v241_v7 = vld [vmem:[#allocation7 + $0x258] sm:$0xff]  ;;  %v240_v9 = vld [vmem:[#allocation7 + $0x250] sm:$0xff]  ;;  %v231_v14 = vld [vmem:[#allocation7 + $0x208] sm:$0xff]  ;;  %v747_v19 = vshrl.u32 %v79_v18, 7  ;;  %vm562_vm2 = vcmp.lt.s32.totalorder %v79_v18, 512 }
  0x56   :  { %417 = vmatprep.subr.mxu0 %v169_v24  ;;  %358 = vmatprep.subr.mxu1 %v271_v29  ;;  %v237_v11 = vld [vmem:[#allocation7 + $0x238] sm:$0xff]  ;;  %v236_v13 = vld [vmem:[#allocation7 + $0x230] sm:$0xff]  ;;  %v230_v16 = vld [vmem:[#allocation7 + $0x200] sm:$0xff] }
  0x57   :  { %418 = vmatpush1.msra.mxu0 %v168_v26  ;;  %359 = vmatpush2.msra.mxu1 %v270_v31  ;;  %v233_v15 = vld [vmem:[#allocation7 + $0x218] sm:$0xff]  ;;  %v232_v17 = vld [vmem:[#allocation7 + $0x210] sm:$0xff]  ;;  %v81_v20 = vsub.s32 0, %v747_v19  ;;  %v85_v22 = vsub.s32 1, %v747_v19  ;;  %v306_v31 = vsub.s32 2, %v747_v19 }
  0x58   :  { %419 = vmatprep.subr.mxu0 %v293_v28  ;;  %360 = vmatprep.subr.mxu1 %v267_v33  ;;  %v77_v21 = vld [vmem:[%s802_s2] sm:$0x3]  ;;  %v310_v33 = vsub.s32 3, %v747_v19  ;;  %s703_s2 = smov 64  }
  0x59   :  { %420 = vmatpush2.msra.mxu0 %v292_v30  ;;  %361 = vmatpush2.msra.mxu1 %v266_v35  ;;  %v82_v23 = vrot.slane %v77_v21, %v81_v20  ;;  %v86_v24 = vrot.slane %v77_v21, %v85_v22 }
  0x5a   :  { %421 = vmatprep.subr.mxu0 %v289_v32  ;;  %362 = vmatprep.subr.mxu1 %v263_v37  ;;  %v294_v32 = vld [vmem:[%s804_s4] sm:$0xf]  ;;  %s705_s4 = smov [#allocation8]  }
  0x5b   :  { %422 = vmatpush2.msra.mxu0 %v288_v34  ;;  %363 = vmatpush2.msra.mxu1 %v262_v39  ;;  %v299_v34 = vrot.slane %v294_v32, %v81_v20  ;;  %v307_v35 = vrot.slane %v294_v32, %v306_v31  ;;  %v311_v37 = vrot.slane %v294_v32, %v310_v33  ;;  %s571_s14 = sshll.u32 %s705_s4, 4  ;;  %s572_s14 = int_to_ptr.vmem [resolvable:$true] %s571_s14 }
  0x5c   :  { %423 = vmatprep.subr.mxu0 %v285_v36  ;;  %364 = vmatprep.subr.mxu1 %v259_v41  ;;  %v303_v36 = vrot.slane %v294_v32, %v85_v22  ;;  %s669_s15 = scalar_lea.vmem %s572_s14, 64  ;;  %p674_p2 = scmp.lt.s32.totalorder %s572_s14, %s572_s14 }
  0x5d   :  { %424 = vmatpush2.msra.mxu0 %v284_v38  ;;  %365 = vmatpush2.msra.mxu1 %v258_v43  ;;  %p670_p1 = scmp.ne.s32.totalorder %s572_s14, %s669_s15  ;;  %p675_p3 = scmp.lt.s32.totalorder %s669_s15, %s669_s15 }
  0x5e   :  { %425 = vmatprep.subr.mxu0 %v281_v40  ;;  %366 = vmatprep.subr.mxu1 %v255_v45 }
  0x5f   :  { %426 = vmatpush2.msra.mxu0 %v280_v42  ;;  %367 = vmatpush2.msra.mxu1 %v254_v47  ;;  %p676_p4 = por %p675_p3, %p674_p2 }
  0x60   :  { %427 = vmatprep.subr.mxu0 %v277_v44  ;;  %368 = vmatprep.subr.mxu1 %v251_v49 }
  0x61   :  { %428 = vmatpush2.msra.mxu0 %v276_v46  ;;  %369 = vmatpush2.msra.mxu1 %v250_v51  ;;  %p677_p5 = pnand %p676_p4, %p670_p1 }
  0x62   :  { %429 = vmatprep.subr.mxu0 %v273_v48  ;;  %370 = vmatprep.subr.mxu1 %v247_v53 }
  0x63   :  { %430 = vmatpush2.msra.mxu0 %v272_v50  ;;  %371 = vmatpush2.msra.mxu1 %v246_v55 }
  0x64   :  { %431 = vmatprep.subr.mxu0 %v269_v52  ;;  %372 = vmatprep.subr.mxu1 %v243_v2 }
  0x65   :  { %432 = vmatpush2.msra.mxu0 %v268_v54  ;;  %373 = vmatpush2.msra.mxu1 %v242_v4 }
  0x66   :  { %433 = vmatprep.subr.mxu0 %v265_v56  ;;  %374 = vmatprep.subr.mxu1 %v239_v6 }
  0x67   :  { %434 = vmatpush2.msra.mxu0 %v264_v57  ;;  %375 = vmatpush2.msra.mxu1 %v238_v8 }
  0x68   :  { %435 = vmatprep.subr.mxu0 %v261_v58  ;;  %376 = vmatprep.subr.mxu1 %v235_v10 }
  0x69   :  { %436 = vmatpush2.msra.mxu0 %v260_v59  ;;  %377 = vmatpush2.msra.mxu1 %v234_v12 }
  0x6a   :  { %437 = vmatprep.subr.mxu0 %v257_v60  ;;  %378 = vmatprep.subr.mxu1 %v231_v14 }
  0x6b   :  { %438 = vmatpush2.msra.mxu0 %v256_v61  ;;  %379 = vmatpush2.msra.mxu1 %v230_v16 }
  0x6c   :  { %439 = vmatprep.subr.mxu0 %v253_v62 }
  0x6d   :  { %440 = vmatpush2.msra.mxu0 %v252_v63 }
  0x6e   :  { %441 = vmatprep.subr.mxu0 %v249_v0 }
  0x6f   :  { %442 = vmatpush2.msra.mxu0 %v248_v1 }
  0x70   :  { %443 = vmatprep.subr.mxu0 %v245_v3 }
  0x71   :  { %444 = vmatpush2.msra.mxu0 %v244_v5 }
  0x72   :  { %445 = vmatprep.subr.mxu0 %v241_v7 }
  0x73   :  { %446 = vmatpush2.msra.mxu0 %v240_v9 }
  0x74   :  { %447 = vmatprep.subr.mxu0 %v237_v11 }
  0x75   :  { %448 = vmatpush2.msra.mxu0 %v236_v13 }
  0x76   :  { %449 = vmatprep.subr.mxu0 %v233_v15 }
  0x77   :  { %450 = vmatpush2.msra.mxu0 %v232_v17  ;;  %v704_v17 = vmov 1966171168  }
  0x78   :  { %v538_v20 = vunpack.c.l.s4 %v704_v17 }
  0xf8   :  { %v159_v25 = vpop.f32.mrf.mxu0 }
  0xf9   :  { %v160_v26 = vadd.f32 %v159_v25, %v82_v23 }
  0xfa   :  { %v161_v27 = vpop.f32.mrf.mxu0 }
  0xfb   :  { %v162_v28 = vadd.f32 %v161_v27, %v86_v24  ;;  %v164_v30 = vmax.f32 %v160_v26, 0.0 }
  0xfd   :  { %v165_v29 = vmax.f32 %v162_v28, 0.0  ;;  %v539_v28 = vunpack.c.0.s8 %v538_v20 }
  0xff   :  { %380 = vmatprep.mubr.f32.mxu1 %v165_v29  ;;  %451 = vmatprep.mubr.f32.mxu0 %v165_v29 }
 0x100   :  { %381 = vmatmul.mubr.f32.vlgmr.msra.gmra.mxu1 %v164_v30  ;;  %452 = vmatmul.mubr.f32.vlgmr.msra.gmra.mxu0 %v164_v30 }
 0x1c0   :  { %v382_v38 = vpop.f32.mrf.mxu1  ;;  %v453_v39 = vpop.f32.mrf.mxu0 }
 0x1c1   :  { %v759_v40 = vadd.f32 %v382_v38, %v299_v34  ;;  %v761_v41 = vadd.f32 %v453_v39, %v307_v35  ;;  %v542_v38 = vsub.s32 %v539_v28, %v747_v19 }
 0x1c2   :  { %v384_v42 = vpop.f32.mrf.mxu1  ;;  %v455_v43 = vpop.f32.mrf.mxu0 }
 0x1c3   :  { %v763_v44 = vadd.f32 %v384_v42, %v303_v36  ;;  %v765_v45 = vadd.f32 %v455_v43, %v311_v37  ;;  %v493_v46 = vmul.f32 %v761_v41, %v761_v41  ;;  %v458_v47 = vmul.f32 %v759_v40, %v759_v40 }
 0x1c5   :  { %501 = vrot.lane.b32.xlu1 %v493_v46, %s703_s2  ;;  %467 = vrot.lane.b32.xlu0 %v458_v47, %s703_s2  ;;  %v510_v48 = vmul.f32 %v765_v45, %v765_v45  ;;  %v476_v49 = vmul.f32 %v763_v44, %v763_v44  ;;  %v460_v50 = vsel %vm459_vm1, %v458_v47, 0.0  ;;  %v494_v52 = vsel %vm459_vm1, %v493_v46, 0.0 }
 0x1c7   :  { %v477_v51 = vsel %vm459_vm1, %v476_v49, 0.0  ;;  %v511_v58 = vsel %vm459_vm1, %v510_v48, 0.0 }
 0x1c9   :  { %518 = vrot.lane.b32.xlu1 %v510_v48, %s703_s2  ;;  %484 = vrot.lane.b32.xlu0 %v476_v49, %s703_s2 }
 0x1e8   :  { %461 = vadd.xlane.f32.xlu0 %v460_v50 }
 0x1ec   :  { %478 = vadd.xlane.f32.xlu0 %v477_v51 }
 0x1ed   :  { %495 = vadd.xlane.f32.xlu1 %v494_v52 }
 0x237   :  { %v502_v53 = vpop.permute.xlu1 %501  ;;  %v468_v54 = vpop.permute.xlu0 %467 }
 0x238   :  { %v470_v55 = vsel %vm459_vm1, %v468_v54, 0.0  ;;  %v504_v56 = vsel %vm459_vm1, %v502_v53, 0.0 }
 0x239   :  { %471 = vadd.xlane.f32.xlu1 %v470_v55  ;;  %505 = vadd.xlane.f32.xlu0 %v504_v56 }
 0x23b   :  { %v485_v57 = vpop.permute.xlu0 %484  ;;  %v519_v60 = vpop.permute.xlu1 %518 }
 0x23c   :  { %v487_v59 = vsel %vm459_vm1, %v485_v57, 0.0  ;;  %v521_v61 = vsel %vm459_vm1, %v519_v60, 0.0 }
 0x23d   :  { %512 = vadd.xlane.f32.xlu1 %v511_v58  ;;  %488 = vadd.xlane.f32.xlu0 %v487_v59 }
 0x241   :  { %522 = vadd.xlane.f32.xlu0 %v521_v61 }
 0x271   :  { %v462_v62 = vpop.xlane.xlu0 %461 }
 0x272   :  { %v463_v1 = vmax.f32 %v462_v62, 1e-24 }
 0x274   :  { %593 = vrsqrt.f32 %v463_v1 }
 0x275   :  { %v479_v63 = vpop.xlane.xlu0 %478 }
 0x276   :  { %v496_v0 = vpop.xlane.xlu1 %495  ;;  %v480_v2 = vmax.f32 %v479_v63, 1e-24 }
 0x277   :  { %v497_v6 = vmax.f32 %v496_v0, 1e-24 }
 0x278   :  { %595 = vrsqrt.f32 %v480_v2 }
 0x281   :  { %v594_v14 = vpop.eup %593 }
 0x282   :  { %v465_v29 = vmul.f32 %v594_v14, %v759_v40 }
 0x285   :  { %v596_v15 = vpop.eup %595 }
 0x286   :  { %v482_v26 = vmul.f32 %v596_v15, %v763_v44 }
 0x2c2   :  { %v472_v3 = vpop.xlane.xlu1 %471  ;;  %v506_v4 = vpop.xlane.xlu0 %505 }
 0x2c3   :  { %v473_v5 = vmax.f32 %v472_v3, 1e-24  ;;  %v507_v7 = vmax.f32 %v506_v4, 1e-24 }
 0x2c5   :  { %597 = vrsqrt.f32 %v473_v5 }
 0x2c6   :  { %v513_v8 = vpop.xlane.xlu1 %512  ;;  %v489_v9 = vpop.xlane.xlu0 %488  ;;  %599 = vrsqrt.f32 %v497_v6 }
 0x2c7   :  { %v514_v10 = vmax.f32 %v513_v8, 1e-24  ;;  %v490_v11 = vmax.f32 %v489_v9, 1e-24  ;;  %601 = vrsqrt.f32 %v507_v7 }
 0x2c9   :  { %603 = vrsqrt.f32 %v490_v11 }
 0x2ca   :  { %v523_v12 = vpop.xlane.xlu0 %522  ;;  %605 = vrsqrt.f32 %v514_v10 }
 0x2cb   :  { %v524_v13 = vmax.f32 %v523_v12, 1e-24 }
 0x2cd   :  { %607 = vrsqrt.f32 %v524_v13 }
 0x2d2   :  { %v598_v16 = vpop.eup %597 }
 0x2d3   :  { %v600_v21 = vpop.eup %599  ;;  %v475_v24 = vmul.f32 %v598_v16, %v759_v40 }
 0x2d4   :  { %v602_v22 = vpop.eup %601  ;;  %v499_v33 = vmul.f32 %v600_v21, %v761_v41 }
 0x2d5   :  { %v509_v30 = vmul.f32 %v602_v22, %v761_v41  ;;  %v527_v36 = vsel %vm89_vm0, %v465_v29, %v475_v24 }
 0x2d6   :  { %v604_v23 = vpop.eup %603 }
 0x2d7   :  { %v606_v25 = vpop.eup %605  ;;  %v492_v27 = vmul.f32 %v604_v23, %v763_v44  ;;  %v529_v39 = vsel %vm89_vm0, %v499_v33, %v509_v30 }
 0x2d8   :  { %v516_v34 = vmul.f32 %v606_v25, %v765_v45 }
 0x2d9   :  { %v528_v32 = vsel %vm89_vm0, %v482_v26, %v492_v27 }
 0x2da   :  { %v608_v31 = vpop.eup %607  ;;  %v535_v37 = vcombine.low %v527_v36, %v528_v32 }
 0x2db   :  { %v526_v35 = vmul.f32 %v608_v31, %v765_v45 }
 0x2dc   :  { %v543_v43 = vrot.slane %v535_v37, %v542_v38 }
 0x2dd   :  { %v530_v40 = vsel %vm89_vm0, %v516_v34, %v526_v35 }
 0x2de   :  { %v536_v42 = vcombine.low %v529_v39, %v530_v40 }
 0x2e0   :  { %v550_v44 = vrot.slane %v536_v42, %v542_v38 }
 0x2e2   :  { %v551_v46 = vcombine.low %v543_v43, %v550_v44 }
 0x2e4   :  { %v558_v41 = vrot.slane %v551_v46, %v542_v38 }
 0x2e6   :  { %564 = vst.msk [vmem:[#allocation8] sm:$0xf] %vm562_vm2, %v558_v41 }
 0x2e7   :  { %680 = shalt.err (!%p677_p5)
}
 0x2e8   :  { %574 = dma.vmem_to_hbm [thread:$0]  %s572_s14, 64, %s805_s5, [#allocation4]  }
 0x2e9   :  { %693 = dma.done.wait [#allocation4], 64  }
 0x2ea   :  { %694 = vsyncadd [#allocation4], 4294967232 }
 0x2eb   :  { %578 = vsyncpa [#allocation3], 1 }
 0x2ec   :  { %579 = vsyncpa [#allocation6], 1 }
 0x2ed   :  { %580 = vsyncpa [#allocation4], 1 }

</bundles_post_ra>
